<compile_context>
chip_gen: v6e
topology: v6e:2x2x1
jax: 0.10.0
libtpu: 0.0.40
codegen_flags: <defaults>
</compile_context>

<pallas_src>
import functools

import jax
import jax.numpy as jnp
from jax.experimental import pallas as pl
from jax.experimental.pallas import tpu as pltpu

_LANE = 128             # vreg lane width
_SUBLANE = 8            # f32 sublane count
_MIN_SPLIT_ROWS = 1024  # >= this many 128-lane rows: use >=2 grid blocks (v7x TCs)


@functools.lru_cache(maxsize=1)
def _target_block_bytes():
    """~2 MiB blocks by default; ~4 MiB on v7x, whose 3.2 TB/s HBM only
    amortizes the ~0.35 us per-grid-step overhead with bigger tiles."""
    try:
        kind = jax.devices()[0].device_kind.lower()
    except Exception:
        kind = ""
    if "v7" in kind or "tpu7" in kind:
        return 4 * 1024 * 1024
    return 2 * 1024 * 1024


# ---------------------------------------------------------------------------
# Backward Pallas kernel: grad_input = weight * grad_output
# ---------------------------------------------------------------------------
def _scale_kernel(w_ref, g_ref, o_ref):
    w = w_ref[0]  # f32 scalar weight from SMEM
    o_ref[...] = (g_ref[...].astype(jnp.float32) * w).astype(o_ref.dtype)


def _pick_tile_rows(rows, max_rows, granule):
    if rows > max_rows:
        return max_rows
    if rows >= _MIN_SPLIT_ROWS:
        # Split into ~2 blocks so the "parallel" grid axis can shard across
        # both v7x TensorCores (one extra cheap grid step on v5e/v6e).
        half = -(-((rows + 1) // 2) // granule) * granule  # round_up(cdiv(rows,2), granule)
        if half < rows:
            return half
    return rows  # full extent: no divisibility constraint


def _scale_by_weight(g, weight):
    """Elementwise weight * g via a tiled, lane-dense Pallas TPU kernel."""
    orig_shape = g.shape
    dtype = jnp.dtype(g.dtype)
    total = g.size

    if total == 0:
        return g

    if dtype.itemsize > 4:
        # TODO(synk): 64-bit grads (x64 mode) — TPU vector units are 32-bit;
        # keep full precision with a plain XLA multiply instead of the kernel.
        return (jnp.asarray(weight, dtype) * g).reshape(orig_shape)

    itemsize = dtype.itemsize
    granule = max(_SUBLANE, 32 // itemsize)  # sublane-pack granule per dtype
    max_rows = max(
        granule,
        (_target_block_bytes() // (_LANE * itemsize)) // granule * granule,
    )

    w_arr = jnp.asarray(weight, jnp.float32).reshape((1,))
    cost = pl.CostEstimate(
        flops=total, transcendentals=0, bytes_accessed=2 * total * itemsize
    )
    cparams = pltpu.CompilerParams(dimension_semantics=("parallel",))

    if total % _LANE == 0:
        # Lane-dense 2-D slab: (rows, 128).  Reshape of a contiguous array is
        # a bitcast — no extra HBM traffic.
        rows = total // _LANE
        slab = g.reshape(rows, _LANE)
        tile_rows = _pick_tile_rows(rows, max_rows, granule)
        grid = (pl.cdiv(rows, tile_rows),)
        out = pl.pallas_call(
            _scale_kernel,
            out_shape=jax.ShapeDtypeStruct((rows, _LANE), dtype),
            grid=grid,
            in_specs=[
                pl.BlockSpec(memory_space=pltpu.MemorySpace.SMEM),    # weight
                pl.BlockSpec((tile_rows, _LANE), lambda i: (i, 0)),   # grad tile
            ],
            out_specs=pl.BlockSpec((tile_rows, _LANE), lambda i: (i, 0)),
            input_output_aliases={1: 0},  # reuse the cotangent buffer in place
            cost_estimate=cost,
            compiler_params=cparams,
        )(w_arr, slab)
        return out.reshape(orig_shape)

    # Ragged total (not a multiple of 128): run on the flat array directly —
    # no pad / slice copies.  Single full-extent block when it fits one block,
    # otherwise 1-D lane-aligned blocks with a masked tail block.
    flat = g.reshape((total,))
    block = min(total, max_rows * _LANE)
    grid = (pl.cdiv(total, block),)
    out = pl.pallas_call(
        _scale_kernel,
        out_shape=jax.ShapeDtypeStruct((total,), dtype),
        grid=grid,
        in_specs=[
            pl.BlockSpec(memory_space=pltpu.MemorySpace.SMEM),
            pl.BlockSpec((block,), lambda i: (i,)),
        ],
        out_specs=pl.BlockSpec((block,), lambda i: (i,)),
        input_output_aliases={1: 0},
        cost_estimate=cost,
        compiler_params=cparams,
    )(w_arr, flat)
    return out.reshape(orig_shape)


# ---------------------------------------------------------------------------
# GradientScalarLayer with custom VJP (weight is a traced value — no recompile
# when the GRL lambda ramps during training)
# ---------------------------------------------------------------------------
@jax.custom_vjp
def _gradient_scalar_p(x, weight):
    del weight
    return x  # mathematical identity: no copy, no kernel


def _gs_fwd(x, weight):
    return x, weight


def _gs_bwd(weight, g):
    # PyTorch returns (weight * grad, None): no gradient flows to weight.
    return _scale_by_weight(g, weight), jnp.zeros_like(weight)


_gradient_scalar_p.defvjp(_gs_fwd, _gs_bwd)


def gradient_scalar(x, weight):
    """Functional API matching PyTorch's `gradient_scalar(input, weight)`."""
    return _gradient_scalar_p(x, jnp.asarray(weight, jnp.float32))


class GradientScalarLayer:
    """JAX/Pallas equivalent of mmdet's GradientScalarLayer."""

    def __init__(self, weight):
        self.weight = float(weight)

    def __call__(self, x, weight=None):
        # `weight` may be overridden with a traced scalar (e.g. a lambda
        # schedule computed inside jit) — value changes never retrace.
        w = self.weight if weight is None else weight
        return gradient_scalar(x, w)

    def __repr__(self):
        return f"GradientScalarLayer(weight={self.weight})"


# ---------------------------------------------------------------------------
# Demo / self-test
# ---------------------------------------------------------------------------
if __name__ == "__main__":
    key = jax.random.PRNGKey(0)
    # NCHW, matching the conv feature maps this layer sees in local_da.py.
    x = jax.random.normal(key, (2, 4, 16, 16), dtype=jnp.float32)

    layer = GradientScalarLayer(weight=-0.1)

    # --- forward: identity, no copy --------------------------------------
    y = jax.block_until_ready(layer(x))
    assert y.shape == x.shape and y.dtype == x.dtype
    assert jnp.array_equal(y, x), "forward must be identity"

    # --- backward: grad scaled by weight (Pallas kernel, grid=(1,)) ------
    def loss(inp):
        return jnp.sum(layer(inp) * 2.0)

    g = jax.block_until_ready(jax.grad(loss)(x))
    assert jnp.allclose(g, jnp.full_like(x, 2.0 * layer.weight), atol=1e-6), \
        "backward must scale grad by weight"

    # --- traced weight under jit: new weight value, same compiled fn -----
    @jax.jit
    def grad_with_weight(inp, w):
        return jax.grad(lambda a: jnp.sum(gradient_scalar(a, w)))(inp)

    # 2*256*16*16 = 131072 elems -> 1024 rows -> split into 2 grid blocks.
    x_med = jax.random.normal(jax.random.PRNGKey(1), (2, 256, 16, 16),
                              dtype=jnp.float32)
    g_a = jax.block_until_ready(grad_with_weight(x_med, jnp.float32(-0.1)))
    g_b = jax.block_until_ready(grad_with_weight(x_med, jnp.float32(0.37)))
    assert jnp.allclose(g_a, jnp.full_like(x_med, -0.1), atol=1e-6)
    assert jnp.allclose(g_b, jnp.full_like(x_med, 0.37), atol=1e-6)

    # --- ragged size (total % 128 != 0): flat path, no pad/slice ---------
    x2 = jax.random.normal(jax.random.PRNGKey(2), (3, 5, 7), dtype=jnp.float32)
    g2 = jax.block_until_ready(jax.grad(lambda a: jnp.sum(layer(a)))(x2))
    assert g2.shape == x2.shape
    assert jnp.allclose(g2, jnp.full_like(x2, layer.weight), atol=1e-6)

    # --- bf16 grads (sublane-packed dtype path) ---------------------------
    x3 = jax.random.normal(jax.random.PRNGKey(3), (2, 4, 16, 16),
                           dtype=jnp.bfloat16)
    g3 = jax.block_until_ready(
        jax.grad(lambda a: jnp.sum(layer(a).astype(jnp.float32)))(x3))
    assert g3.dtype == jnp.bfloat16
    assert jnp.allclose(g3.astype(jnp.float32),
                        jnp.full(x3.shape, layer.weight, jnp.float32),
                        atol=1e-2)

    print("KERNEL_OK")
</pallas_src>

<mosaic_0001>
module attributes {stable_mosaic.version = 11 : i64} {
  func.func @_scale_kernel(%arg0: i32, %arg1: memref<1xf32, #tpu.memory_space<smem>>, %arg2: memref<16x128xf32, #tpu.memory_space<vmem>>, %arg3: memref<16x128xf32, #tpu.memory_space<vmem>>) attributes {dimension_semantics = [#tpu.dimension_semantics<parallel>], iteration_bounds = array<i64: 1>, scalar_prefetch = 0 : i64, scratch_operands = 0 : i64, tpu.core_type = #tpu.core_type<tc>, window_params = [{transform_indices = @transform_0, window_bounds = array<i64: 1>}, {transform_indices = @transform_1, window_bounds = array<i64: 16, 128>}, {transform_indices = @transform_2, window_bounds = array<i64: 16, 128>}]} {
    %c0 = arith.constant 0 : index
    %0 = memref.load %arg1[%c0] : memref<1xf32, #tpu.memory_space<smem>>
    %c0_0 = arith.constant 0 : index
    %c0_1 = arith.constant 0 : index
    %1 = vector.load %arg2[%c0_0, %c0_1] : memref<16x128xf32, #tpu.memory_space<vmem>>, vector<16x128xf32>
    %2 = vector.broadcast %0 : f32 to vector<16x128xf32>
    %3 = arith.mulf %1, %2 : vector<16x128xf32>
    %c0_2 = arith.constant 0 : index
    %c0_3 = arith.constant 0 : index
    %4 = vector.load %arg3[%c0_2, %c0_3] : memref<16x128xf32, #tpu.memory_space<vmem>>, vector<16x128xf32>
    tpu.vector_store %arg3[%c0_2, %c0_3], %3 {strides = array<i32>} : memref<16x128xf32, #tpu.memory_space<vmem>>, vector<16x128xf32>,
    return
  }
  func.func @transform_0(%arg0: i32) -> i32 {
    %c0_i32 = arith.constant 0 : i32
    %c0_i32_0 = arith.constant 0 : i32
    return %c0_i32 : i32
  }
  func.func @transform_1(%arg0: i32) -> (i32, i32) {
    %c0_i32 = arith.constant 0 : i32
    %c0_i32_0 = arith.constant 0 : i32
    return %arg0, %c0_i32 : i32, i32
  }
  func.func @transform_2(%arg0: i32) -> (i32, i32) {
    %c0_i32 = arith.constant 0 : i32
    %c0_i32_0 = arith.constant 0 : i32
    return %arg0, %c0_i32 : i32, i32
  }
}

</mosaic_0001>

<bundles_post_ra>
// kernel: tpu_custom_call.1
= control target key start
LH: loop header
LB: loop body
LE: loop exit
PB: predicated region body
PF: predicated region fallthrough
CT: control target
= control target key end

     0   :  { %8 = vsyncpa [#allocation4], 0  ;;  %s128_s0 = inlined_call_operand.<no memory space> [shape: f32[1], index: 0, kind: input, shape index: {}]   ;;  %s129_s1 = inlined_call_operand.hbm [shape: f32[16,128], index: 1, kind: input, shape index: {}, may-alias: {1,2}]   ;;  %s130_s2 = inlined_call_operand.hbm [shape: f32[16,128], index: 2, kind: output, shape index: {}, may-alias: {1,2}]  }
   0x1   :  { %9 = vsyncpa [#allocation5], 0  ;;  %s100_s9 = smov [#allocation3]  }
   0x2   :  { %s17_s10 = sshll.u32 %s100_s9, 4  ;;  %s18_s10 = int_to_ptr.vmem [resolvable:$true] %s17_s10 }
   0x3   :  { %s64_s11 = scalar_lea.vmem %s18_s10, 256  ;;  %p69_p1 = scmp.lt.s32.totalorder %s18_s10, %s18_s10 }
   0x4   :  { %p65_p0 = scmp.ne.s32.totalorder %s18_s10, %s64_s11  ;;  %p70_p2 = scmp.lt.s32.totalorder %s64_s11, %s64_s11 }
   0x6   :  { %p71_p3 = por %p70_p2, %p69_p1 }
   0x8   :  { %p72_p4 = pnand %p71_p3, %p65_p0 }
   0xa   :  { %75 = shalt.err (!%p72_p4)
}
   0xb   :  { %s101_s12 = smov 128   ;;  %s102_s13 = smov 8  }
   0xc   :  { %23 = dma.hbm_to_vmem [thread:$0]  %s129_s1, 256, %s18_s10, [#allocation4], %s101_s12, %s101_s12, %s102_s13  }
   0xd   :  { %96 = dma.done.wait [#allocation4], 256  }
   0xe   :  { %97 = vsyncadd [#allocation4], 4294967040  ;;  %v30_v0 = vstv %s128_s0  ;;  %s103_s18 = smov [#allocation6]   ;;  %v28_v1 = vld [vmem:[#allocation3] sm:$0xff]  ;;  %v29_v2 = vld [vmem:[#allocation3 + $0x8] sm:$0xff] }
   0xf   :  { %s40_s19 = sshll.u32 %s103_s18, 4  ;;  %v31_v3 = vmul.f32 %v30_v0, %v28_v1  ;;  %v32_v4 = vmul.f32 %v30_v0, %v29_v2  ;;  %s41_s19 = int_to_ptr.vmem [resolvable:$true] %s40_s19 }
  0x10   :  { %s76_s20 = scalar_lea.vmem %s41_s19, 256  ;;  %p81_p6 = scmp.lt.s32.totalorder %s41_s19, %s41_s19 }
  0x11   :  { %33 = vst [vmem:[#allocation6] sm:$0xff] %v31_v3  ;;  %34 = vst [vmem:[#allocation6 + $0x8] sm:$0xff] %v32_v4  ;;  %p77_p5 = scmp.ne.s32.totalorder %s41_s19, %s76_s20  ;;  %p82_p7 = scmp.lt.s32.totalorder %s76_s20, %s76_s20 }
  0x13   :  { %p83_p8 = por %p82_p7, %p81_p6 }
  0x15   :  { %p84_p9 = pnand %p83_p8, %p77_p5 }
  0x17   :  { %87 = shalt.err (!%p84_p9)
}
  0x18   :  { %46 = dma.vmem_to_hbm [thread:$0]  %s41_s19, 256, %s130_s2, [#allocation5], %s101_s12, %s101_s12, %s102_s13  }
  0x19   :  { %98 = dma.done.wait [#allocation5], 256  }
  0x1a   :  { %99 = vsyncadd [#allocation5], 4294967040 }
  0x1b   :  { %50 = vsyncpa [#allocation4], 1 }
  0x1c   :  { %51 = vsyncpa [#allocation5], 1 }

</bundles_post_ra>
